<compile_context>
chip_gen: v7x
topology: tpu7x:2x2x1
jax: 0.10.0
libtpu: 0.0.40
codegen_flags: <defaults>
</compile_context>

<pallas_src>
import functools
import math

import jax
import jax.numpy as jnp
import numpy as np
from jax import lax
from jax.experimental import pallas as pl
from jax.experimental.pallas import tpu as pltpu


def _head_fused_kernel(p_ref, pperm_ref, dec_ref, *, nA, nC, nG, stride, anchors):
    """Decode + permute one batch element.

    p_ref:     (1, K, S)  raw logits, channel-major (K = nA*(10+nC), S = nG*nG)
    pperm_ref: (1, S, K)  raw logits in the final permuted layout
    dec_ref:   (1, S, K)  decoded boxes in the final permuted layout
    Per-anchor channel layout (c = row mod (10+nC)):
      [dx, dy, dw, dh, a0..a3, r, conf, prob...]
    """
    C = 10 + nC
    K = nA * C
    S = nG * nG

    p2 = p_ref[0]  # (K, S) float32, dense tile (10 vregs at K=36, S=256)

    # ---- tiny broadcastable index / mask tensors (no full (K,S) masks) ----
    ch = lax.broadcasted_iota(jnp.int32, (K, 1), 0)    # channel id a*C + c, (K,1)
    col = lax.broadcasted_iota(jnp.int32, (1, S), 1)   # spatial id s = i*nG + j, (1,S)
    if (nG & (nG - 1)) == 0:                           # power-of-two grid: bit ops only
        shift = int(math.log2(nG))
        gy = (col >> shift).astype(jnp.float32)        # i
        gx = (col & (nG - 1)).astype(jnp.float32)      # j
    else:
        # TODO(synk): non-power-of-two nG path (i32 div/mod on a lane iota) untested on Mosaic.
        gy_i = col // nG
        gx = (col - gy_i * nG).astype(jnp.float32)
        gy = gy_i.astype(jnp.float32)

    def band(lo, hi):                                  # (K,1) bool channel-group mask
        m = (ch >= lo) & (ch < hi)
        for a in range(1, nA):
            m = m | ((ch >= a * C + lo) & (ch < a * C + hi))
        return m

    is_xy = band(0, 2)
    is_wh = band(2, 4)
    is_a = band(4, 8)
    is_r = band(8, 9)
    is_x = band(0, 1)

    # anchor*stride scale as a (K,1) column (scalar constants only; no captured arrays)
    asc = jnp.zeros((K, 1), jnp.float32)
    for a in range(nA):
        asc = jnp.where(ch == a * C + 2, float(anchors[a][0]) * stride, asc)
        asc = jnp.where(ch == a * C + 3, float(anchors[a][1]) * stride, asc)

    # ---- elementwise decode over the dense (K, S) tile (VPU/EUP) ----
    sig = pl.reciprocal(1.0 + jnp.exp(-p2), approx=False)   # sigmoid; recip on EUP
    r6 = jnp.clip(p2 + 3.0, 0.0, 6.0) * (1.0 / 6.0)         # relu6(x + 3) / 6
    wh = jnp.exp(p2) * asc                                   # exp * anchor * stride
    # (non-wh rows give exp*0; any inf*0 NaN is discarded by the select chain below)

    grid_v = jnp.where(is_x, gx, gy)                         # (K,1) x (1,S) -> (K,S)
    xy = (sig * 1.05 - (1.05 - 1.0) / 2.0 + grid_v) * stride

    # a-channel gate: gate by pred_r of the same anchor (row a*C + 8)
    gate = jnp.ones((K, S), jnp.float32)                     # splat constant
    for a in range(nA):
        pr = r6[a * C + 8: a * C + 9, :]                     # (1, S) pred_r, anchor a
        ga = jnp.where(pr > 0.85, 0.0, 1.0)                  # (1, S)
        in_a = (ch >= a * C + 4) & (ch < a * C + 8)          # (K, 1)
        gate = jnp.where(in_a, ga, gate)
    a_val = r6 * gate

    # merge channel groups with broadcasting selects (no sublane concatenation)
    dec = jnp.where(is_xy, xy,
          jnp.where(is_wh, wh,
          jnp.where(is_a, a_val,
          jnp.where(is_r, r6, sig))))                        # conf / prob -> sigmoid

    # ---- single fused permute ----
    # Stack raw logits and decoded boxes along the channel (sublane) axis, pad to a
    # fully (8,128)-aligned sublane count, do ONE transpose, then lane-slice the two
    # payloads out of the transposed tile.  DEC_OFF is 8-aligned so the decoded block
    # lands on sublane-tile boundaries before the transpose.
    DEC_OFF = ((K + 7) // 8) * 8                    # 40 for K=36
    KP = ((DEC_OFF + K + 127) // 128) * 128         # 128: keep the proven aligned shape
    pieces = [p2]
    if DEC_OFF > K:
        pieces.append(jnp.zeros((DEC_OFF - K, S), jnp.float32))
    pieces.append(dec)
    tail = KP - (DEC_OFF + K)
    if tail > 0:
        pieces.append(jnp.zeros((tail, S), jnp.float32))
    stack = jnp.concatenate(pieces, axis=0)         # (KP, S), (8,128)-aligned
    t = jnp.transpose(stack, (1, 0))                # (S, KP): one XLU transpose total

    pperm_ref[0] = t[:, :K]                         # lane-width K (<128) masked stores:
    dec_ref[0] = t[:, DEC_OFF:DEC_OFF + K]          # accepted tradeoff at nG=16


def head_forward(p_nchw, anchors, stride, nC):
    """Equivalent of Head.forward in eval mode.

    p_nchw: (bs, nA*(10+nC), nG, nG) float32
    Returns (p_permuted, pred_bbox_flat):
      p_permuted:     (bs, nG, nG, nA, 10+nC)
      pred_bbox_flat: (bs*nG*nG*nA, 10+nC)
    """
    anchors = np.asarray(anchors, dtype=np.float32)
    nA = anchors.shape[0]
    C = 10 + nC
    bs, ch, nG, nG2 = p_nchw.shape
    assert ch == nA * C and nG == nG2
    K = nA * C
    S = nG * nG

    p_flat = p_nchw.reshape(bs, K, S)  # contiguous view, no data movement

    kernel = functools.partial(
        _head_fused_kernel,
        nA=nA, nC=nC, nG=nG, stride=float(stride),
        anchors=[(float(a), float(b)) for a, b in anchors],
    )

    pperm3, dec3 = pl.pallas_call(
        kernel,
        grid=(bs,),   # bs>=2 keeps both v7x TensorCores busy; trivial overhead on v5e/v6e
        in_specs=[pl.BlockSpec((1, K, S), lambda b: (b, 0, 0))],
        out_specs=(pl.BlockSpec((1, S, K), lambda b: (b, 0, 0)),
                   pl.BlockSpec((1, S, K), lambda b: (b, 0, 0))),
        out_shape=(jax.ShapeDtypeStruct((bs, S, K), jnp.float32),
                   jax.ShapeDtypeStruct((bs, S, K), jnp.float32)),
        compiler_params=pltpu.CompilerParams(dimension_semantics=("parallel",)),
    )(p_flat)

    # Both reshapes below are contiguous views (no HBM round trip, no transpose op).
    p_perm = pperm3.reshape(bs, nG, nG, nA, C)
    pred_bbox = dec3.reshape(-1, C)
    # TODO(synk): training-mode branch (un-flattened pred_bbox) not exposed; eval only.
    return p_perm, pred_bbox


def _reference_decode(p_perm, anchors, stride):
    """Pure-JAX reference of Head.__decode (p_perm: bs, nG, nG, nA, C)."""
    bs, nG, _, nA, C = p_perm.shape
    anchors = jnp.asarray(anchors, dtype=jnp.float32)
    dxdy = p_perm[..., 0:2]
    dwdh = p_perm[..., 2:4]
    a = p_perm[..., 4:8]
    r = p_perm[..., 8:9]
    conf = p_perm[..., 9:10]
    prob = p_perm[..., 10:]
    y = jnp.arange(nG)[:, None].repeat(nG, axis=1)
    x = jnp.arange(nG)[None, :].repeat(nG, axis=0)
    grid_xy = jnp.stack([x, y], axis=-1).astype(jnp.float32)
    grid_xy = jnp.broadcast_to(grid_xy[None, :, :, None, :], (bs, nG, nG, nA, 2))
    pred_xy = (jax.nn.sigmoid(dxdy) * 1.05 - 0.025 + grid_xy) * stride
    pred_wh = jnp.exp(dwdh) * anchors * stride
    pred_a = jnp.clip(a + 3.0, 0.0, 6.0) / 6.0
    pred_r = jnp.clip(r + 3.0, 0.0, 6.0) / 6.0
    maskr = jnp.where(pred_r > 0.85, 0.0, 1.0)
    pred_a = pred_a * maskr
    pred_conf = jax.nn.sigmoid(conf)
    pred_prob = jax.nn.sigmoid(prob)
    return jnp.concatenate(
        [pred_xy, pred_wh, pred_a, pred_r, pred_conf, pred_prob], axis=-1
    ).reshape(-1, C)


if __name__ == "__main__":
    # Deterministic config (synthetic parameters for the __init__ signature).
    nC = 2                       # number of classes
    anchors = np.array([[1.25, 1.625], [2.0, 3.75], [4.125, 2.875]], dtype=np.float32)
    stride = 8.0
    nA = anchors.shape[0]        # 3
    C = 10 + nC                  # 12

    bs, nG = 2, 16
    key = jax.random.PRNGKey(0)
    x = jax.random.normal(key, (bs, nA * C, nG, nG), dtype=jnp.float32)

    fwd = jax.jit(lambda inp: head_forward(inp, anchors, stride, nC))
    p_perm, pred_bbox = fwd(x)
    jax.block_until_ready((p_perm, pred_bbox))

    # sanity check against pure-JAX references
    p_perm_ref = jnp.transpose(x.reshape(bs, nA, C, nG, nG), (0, 3, 4, 1, 2))
    bbox_ref = _reference_decode(p_perm_ref, anchors, stride)

    assert p_perm.shape == (bs, nG, nG, nA, C)
    assert pred_bbox.shape == (bs * nG * nG * nA, C)
    assert jnp.array_equal(p_perm, p_perm_ref)
    assert jnp.allclose(pred_bbox, bbox_ref, atol=1e-4, rtol=1e-5)

    print("KERNEL_OK")
</pallas_src>

<mosaic_0001>
module attributes {stable_mosaic.version = 11 : i64} {
  func.func @_head_fused_kernel(%arg0: i32, %arg1: memref<1x36x256xf32, #tpu.memory_space<vmem>>, %arg2: memref<1x256x36xf32, #tpu.memory_space<vmem>>, %arg3: memref<1x256x36xf32, #tpu.memory_space<vmem>>) attributes {dimension_semantics = [#tpu.dimension_semantics<parallel>], iteration_bounds = array<i64: 2>, scalar_prefetch = 0 : i64, scratch_operands = 0 : i64, tpu.core_type = #tpu.core_type<tc>, window_params = [{transform_indices = @transform_0, window_bounds = array<i64: 1, 36, 256>}, {transform_indices = @transform_1, window_bounds = array<i64: 1, 256, 36>}, {transform_indices = @transform_2, window_bounds = array<i64: 1, 256, 36>}]} {
    %c0 = arith.constant 0 : index
    %c0_0 = arith.constant 0 : index
    %c0_1 = arith.constant 0 : index
    %0 = vector.load %arg1[%c0, %c0_0, %c0_1] : memref<1x36x256xf32, #tpu.memory_space<vmem>>, vector<1x36x256xf32>
    %1 = vector.shape_cast %0 : vector<1x36x256xf32> to vector<36x256xf32>
    %2 = tpu.iota {dimensions = array<i32: 0>} : vector<36x1xi32>
    %3 = tpu.iota {dimensions = array<i32: 1>} : vector<1x256xi32>
    %c4_i32 = arith.constant 4 : i32
    %4 = vector.broadcast %c4_i32 : i32 to vector<1x256xi32>
    %5 = arith.shrsi %3, %4 : vector<1x256xi32>
    %6 = arith.sitofp %5 : vector<1x256xi32> to vector<1x256xf32>
    %c15_i32 = arith.constant 15 : i32
    %7 = vector.broadcast %c15_i32 : i32 to vector<1x256xi32>
    %8 = arith.andi %3, %7 : vector<1x256xi32>
    %9 = arith.sitofp %8 : vector<1x256xi32> to vector<1x256xf32>
    %c0_i32 = arith.constant 0 : i32
    %10 = vector.broadcast %c0_i32 : i32 to vector<36x1xi32>
    %11 = arith.cmpi sge, %2, %10 : vector<36x1xi32>
    %c2_i32 = arith.constant 2 : i32
    %12 = vector.broadcast %c2_i32 : i32 to vector<36x1xi32>
    %13 = arith.cmpi slt, %2, %12 : vector<36x1xi32>
    %14 = arith.andi %11, %13 : vector<36x1xi1>
    %c12_i32 = arith.constant 12 : i32
    %15 = vector.broadcast %c12_i32 : i32 to vector<36x1xi32>
    %16 = arith.cmpi sge, %2, %15 : vector<36x1xi32>
    %c14_i32 = arith.constant 14 : i32
    %17 = vector.broadcast %c14_i32 : i32 to vector<36x1xi32>
    %18 = arith.cmpi slt, %2, %17 : vector<36x1xi32>
    %19 = arith.andi %16, %18 : vector<36x1xi1>
    %20 = arith.ori %14, %19 : vector<36x1xi1>
    %c24_i32 = arith.constant 24 : i32
    %21 = vector.broadcast %c24_i32 : i32 to vector<36x1xi32>
    %22 = arith.cmpi sge, %2, %21 : vector<36x1xi32>
    %c26_i32 = arith.constant 26 : i32
    %23 = vector.broadcast %c26_i32 : i32 to vector<36x1xi32>
    %24 = arith.cmpi slt, %2, %23 : vector<36x1xi32>
    %25 = arith.andi %22, %24 : vector<36x1xi1>
    %26 = arith.ori %20, %25 : vector<36x1xi1>
    %c2_i32_2 = arith.constant 2 : i32
    %27 = vector.broadcast %c2_i32_2 : i32 to vector<36x1xi32>
    %28 = arith.cmpi sge, %2, %27 : vector<36x1xi32>
    %c4_i32_3 = arith.constant 4 : i32
    %29 = vector.broadcast %c4_i32_3 : i32 to vector<36x1xi32>
    %30 = arith.cmpi slt, %2, %29 : vector<36x1xi32>
    %31 = arith.andi %28, %30 : vector<36x1xi1>
    %c14_i32_4 = arith.constant 14 : i32
    %32 = vector.broadcast %c14_i32_4 : i32 to vector<36x1xi32>
    %33 = arith.cmpi sge, %2, %32 : vector<36x1xi32>
    %c16_i32 = arith.constant 16 : i32
    %34 = vector.broadcast %c16_i32 : i32 to vector<36x1xi32>
    %35 = arith.cmpi slt, %2, %34 : vector<36x1xi32>
    %36 = arith.andi %33, %35 : vector<36x1xi1>
    %37 = arith.ori %31, %36 : vector<36x1xi1>
    %c26_i32_5 = arith.constant 26 : i32
    %38 = vector.broadcast %c26_i32_5 : i32 to vector<36x1xi32>
    %39 = arith.cmpi sge, %2, %38 : vector<36x1xi32>
    %c28_i32 = arith.constant 28 : i32
    %40 = vector.broadcast %c28_i32 : i32 to vector<36x1xi32>
    %41 = arith.cmpi slt, %2, %40 : vector<36x1xi32>
    %42 = arith.andi %39, %41 : vector<36x1xi1>
    %43 = arith.ori %37, %42 : vector<36x1xi1>
    %c4_i32_6 = arith.constant 4 : i32
    %44 = vector.broadcast %c4_i32_6 : i32 to vector<36x1xi32>
    %45 = arith.cmpi sge, %2, %44 : vector<36x1xi32>
    %c8_i32 = arith.constant 8 : i32
    %46 = vector.broadcast %c8_i32 : i32 to vector<36x1xi32>
    %47 = arith.cmpi slt, %2, %46 : vector<36x1xi32>
    %48 = arith.andi %45, %47 : vector<36x1xi1>
    %c16_i32_7 = arith.constant 16 : i32
    %49 = vector.broadcast %c16_i32_7 : i32 to vector<36x1xi32>
    %50 = arith.cmpi sge, %2, %49 : vector<36x1xi32>
    %c20_i32 = arith.constant 20 : i32
    %51 = vector.broadcast %c20_i32 : i32 to vector<36x1xi32>
    %52 = arith.cmpi slt, %2, %51 : vector<36x1xi32>
    %53 = arith.andi %50, %52 : vector<36x1xi1>
    %54 = arith.ori %48, %53 : vector<36x1xi1>
    %c28_i32_8 = arith.constant 28 : i32
    %55 = vector.broadcast %c28_i32_8 : i32 to vector<36x1xi32>
    %56 = arith.cmpi sge, %2, %55 : vector<36x1xi32>
    %c32_i32 = arith.constant 32 : i32
    %57 = vector.broadcast %c32_i32 : i32 to vector<36x1xi32>
    %58 = arith.cmpi slt, %2, %57 : vector<36x1xi32>
    %59 = arith.andi %56, %58 : vector<36x1xi1>
    %60 = arith.ori %54, %59 : vector<36x1xi1>
    %c8_i32_9 = arith.constant 8 : i32
    %61 = vector.broadcast %c8_i32_9 : i32 to vector<36x1xi32>
    %62 = arith.cmpi sge, %2, %61 : vector<36x1xi32>
    %c9_i32 = arith.constant 9 : i32
    %63 = vector.broadcast %c9_i32 : i32 to vector<36x1xi32>
    %64 = arith.cmpi slt, %2, %63 : vector<36x1xi32>
    %65 = arith.andi %62, %64 : vector<36x1xi1>
    %c20_i32_10 = arith.constant 20 : i32
    %66 = vector.broadcast %c20_i32_10 : i32 to vector<36x1xi32>
    %67 = arith.cmpi sge, %2, %66 : vector<36x1xi32>
    %c21_i32 = arith.constant 21 : i32
    %68 = vector.broadcast %c21_i32 : i32 to vector<36x1xi32>
    %69 = arith.cmpi slt, %2, %68 : vector<36x1xi32>
    %70 = arith.andi %67, %69 : vector<36x1xi1>
    %71 = arith.ori %65, %70 : vector<36x1xi1>
    %c32_i32_11 = arith.constant 32 : i32
    %72 = vector.broadcast %c32_i32_11 : i32 to vector<36x1xi32>
    %73 = arith.cmpi sge, %2, %72 : vector<36x1xi32>
    %c33_i32 = arith.constant 33 : i32
    %74 = vector.broadcast %c33_i32 : i32 to vector<36x1xi32>
    %75 = arith.cmpi slt, %2, %74 : vector<36x1xi32>
    %76 = arith.andi %73, %75 : vector<36x1xi1>
    %77 = arith.ori %71, %76 : vector<36x1xi1>
    %c0_i32_12 = arith.constant 0 : i32
    %78 = vector.broadcast %c0_i32_12 : i32 to vector<36x1xi32>
    %79 = arith.cmpi sge, %2, %78 : vector<36x1xi32>
    %c1_i32 = arith.constant 1 : i32
    %80 = vector.broadcast %c1_i32 : i32 to vector<36x1xi32>
    %81 = arith.cmpi slt, %2, %80 : vector<36x1xi32>
    %82 = arith.andi %79, %81 : vector<36x1xi1>
    %c12_i32_13 = arith.constant 12 : i32
    %83 = vector.broadcast %c12_i32_13 : i32 to vector<36x1xi32>
    %84 = arith.cmpi sge, %2, %83 : vector<36x1xi32>
    %c13_i32 = arith.constant 13 : i32
    %85 = vector.broadcast %c13_i32 : i32 to vector<36x1xi32>
    %86 = arith.cmpi slt, %2, %85 : vector<36x1xi32>
    %87 = arith.andi %84, %86 : vector<36x1xi1>
    %88 = arith.ori %82, %87 : vector<36x1xi1>
    %c24_i32_14 = arith.constant 24 : i32
    %89 = vector.broadcast %c24_i32_14 : i32 to vector<36x1xi32>
    %90 = arith.cmpi sge, %2, %89 : vector<36x1xi32>
    %c25_i32 = arith.constant 25 : i32
    %91 = vector.broadcast %c25_i32 : i32 to vector<36x1xi32>
    %92 = arith.cmpi slt, %2, %91 : vector<36x1xi32>
    %93 = arith.andi %90, %92 : vector<36x1xi1>
    %94 = arith.ori %88, %93 : vector<36x1xi1>
    %cst = arith.constant 0.000000e+00 : f32
    %95 = vector.broadcast %cst : f32 to vector<36x1xf32>
    %c2_i32_15 = arith.constant 2 : i32
    %96 = vector.broadcast %c2_i32_15 : i32 to vector<36x1xi32>
    %97 = arith.cmpi eq, %2, %96 : vector<36x1xi32>
    %cst_16 = arith.constant 1.000000e+01 : f32
    %98 = vector.broadcast %cst_16 : f32 to vector<36x1xf32>
    %99 = arith.select %97, %98, %95 : vector<36x1xi1>, vector<36x1xf32>
    %c3_i32 = arith.constant 3 : i32
    %100 = vector.broadcast %c3_i32 : i32 to vector<36x1xi32>
    %101 = arith.cmpi eq, %2, %100 : vector<36x1xi32>
    %cst_17 = arith.constant 1.300000e+01 : f32
    %102 = vector.broadcast %cst_17 : f32 to vector<36x1xf32>
    %103 = arith.select %101, %102, %99 : vector<36x1xi1>, vector<36x1xf32>
    %c14_i32_18 = arith.constant 14 : i32
    %104 = vector.broadcast %c14_i32_18 : i32 to vector<36x1xi32>
    %105 = arith.cmpi eq, %2, %104 : vector<36x1xi32>
    %cst_19 = arith.constant 1.600000e+01 : f32
    %106 = vector.broadcast %cst_19 : f32 to vector<36x1xf32>
    %107 = arith.select %105, %106, %103 : vector<36x1xi1>, vector<36x1xf32>
    %c15_i32_20 = arith.constant 15 : i32
    %108 = vector.broadcast %c15_i32_20 : i32 to vector<36x1xi32>
    %109 = arith.cmpi eq, %2, %108 : vector<36x1xi32>
    %cst_21 = arith.constant 3.000000e+01 : f32
    %110 = vector.broadcast %cst_21 : f32 to vector<36x1xf32>
    %111 = arith.select %109, %110, %107 : vector<36x1xi1>, vector<36x1xf32>
    %c26_i32_22 = arith.constant 26 : i32
    %112 = vector.broadcast %c26_i32_22 : i32 to vector<36x1xi32>
    %113 = arith.cmpi eq, %2, %112 : vector<36x1xi32>
    %cst_23 = arith.constant 3.300000e+01 : f32
    %114 = vector.broadcast %cst_23 : f32 to vector<36x1xf32>
    %115 = arith.select %113, %114, %111 : vector<36x1xi1>, vector<36x1xf32>
    %c27_i32 = arith.constant 27 : i32
    %116 = vector.broadcast %c27_i32 : i32 to vector<36x1xi32>
    %117 = arith.cmpi eq, %2, %116 : vector<36x1xi32>
    %cst_24 = arith.constant 2.300000e+01 : f32
    %118 = vector.broadcast %cst_24 : f32 to vector<36x1xf32>
    %119 = arith.select %117, %118, %115 : vector<36x1xi1>, vector<36x1xf32>
    %cst_25 = arith.constant 0.000000e+00 : f32
    %120 = vector.broadcast %cst_25 : f32 to vector<36x256xf32>
    %121 = arith.subf %120, %1 : vector<36x256xf32>
    %122 = math.exp %121 : vector<36x256xf32>
    %cst_26 = arith.constant 1.000000e+00 : f32
    %123 = vector.broadcast %cst_26 : f32 to vector<36x256xf32>
    %124 = arith.addf %123, %122 : vector<36x256xf32>
    %125 = tpu.reciprocal %124 : vector<36x256xf32> -> vector<36x256xf32>
    %cst_27 = arith.constant 3.000000e+00 : f32
    %126 = vector.broadcast %cst_27 : f32 to vector<36x256xf32>
    %127 = arith.addf %1, %126 : vector<36x256xf32>
    %cst_28 = arith.constant 0.000000e+00 : f32
    %cst_29 = arith.constant 6.000000e+00 : f32
    %128 = vector.broadcast %cst_28 : f32 to vector<36x256xf32>
    %129 = arith.maximumf %128, %127 : vector<36x256xf32>
    %130 = vector.broadcast %cst_29 : f32 to vector<36x256xf32>
    %131 = arith.minimumf %130, %129 : vector<36x256xf32>
    %cst_30 = arith.constant 0.166666672 : f32
    %132 = vector.broadcast %cst_30 : f32 to vector<36x256xf32>
    %133 = arith.mulf %131, %132 : vector<36x256xf32>
    %134 = math.exp %1 : vector<36x256xf32>
    %135 = vector.broadcast %119 : vector<36x1xf32> to vector<36x256xf32>
    %136 = arith.mulf %134, %135 : vector<36x256xf32>
    %137 = vector.shape_cast %94 : vector<36x1xi1> to vector<36x1xi1>
    %138 = vector.broadcast %137 : vector<36x1xi1> to vector<36x256xi1>
    %139 = vector.shape_cast %9 : vector<1x256xf32> to vector<1x256xf32>
    %140 = vector.broadcast %139 : vector<1x256xf32> to vector<36x256xf32>
    %141 = vector.shape_cast %6 : vector<1x256xf32> to vector<1x256xf32>
    %142 = vector.broadcast %141 : vector<1x256xf32> to vector<36x256xf32>
    %143 = arith.select %138, %140, %142 : vector<36x256xi1>, vector<36x256xf32>
    %cst_31 = arith.constant 1.050000e+00 : f32
    %144 = vector.broadcast %cst_31 : f32 to vector<36x256xf32>
    %145 = arith.mulf %125, %144 : vector<36x256xf32>
    %cst_32 = arith.constant 2.500000e-02 : f32
    %146 = vector.broadcast %cst_32 : f32 to vector<36x256xf32>
    %147 = arith.subf %145, %146 : vector<36x256xf32>
    %148 = arith.addf %147, %143 : vector<36x256xf32>
    %cst_33 = arith.constant 8.000000e+00 : f32
    %149 = vector.broadcast %cst_33 : f32 to vector<36x256xf32>
    %150 = arith.mulf %148, %149 : vector<36x256xf32>
    %cst_34 = arith.constant 1.000000e+00 : f32
    %151 = vector.broadcast %cst_34 : f32 to vector<36x256xf32>
    %152 = vector.extract_strided_slice %133 {offsets = [8, 0], sizes = [1, 256], strides = [1, 1]} : vector<36x256xf32> to vector<1x256xf32>
    %cst_35 = arith.constant 8.500000e-01 : f32
    %153 = vector.broadcast %cst_35 : f32 to vector<1x256xf32>
    %154 = arith.cmpf ogt, %152, %153 : vector<1x256xf32>
    %cst_36 = arith.constant 0.000000e+00 : f32
    %cst_37 = arith.constant 1.000000e+00 : f32
    %155 = vector.broadcast %cst_36 : f32 to vector<1x256xf32>
    %156 = vector.broadcast %cst_37 : f32 to vector<1x256xf32>
    %157 = arith.select %154, %155, %156 : vector<1x256xi1>, vector<1x256xf32>
    %c4_i32_38 = arith.constant 4 : i32
    %158 = vector.broadcast %c4_i32_38 : i32 to vector<36x1xi32>
    %159 = arith.cmpi sge, %2, %158 : vector<36x1xi32>
    %c8_i32_39 = arith.constant 8 : i32
    %160 = vector.broadcast %c8_i32_39 : i32 to vector<36x1xi32>
    %161 = arith.cmpi slt, %2, %160 : vector<36x1xi32>
    %162 = arith.andi %159, %161 : vector<36x1xi1>
    %163 = vector.shape_cast %162 : vector<36x1xi1> to vector<36x1xi1>
    %164 = vector.broadcast %163 : vector<36x1xi1> to vector<36x256xi1>
    %165 = vector.shape_cast %157 : vector<1x256xf32> to vector<1x256xf32>
    %166 = vector.broadcast %165 : vector<1x256xf32> to vector<36x256xf32>
    %167 = arith.select %164, %166, %151 : vector<36x256xi1>, vector<36x256xf32>
    %168 = vector.extract_strided_slice %133 {offsets = [20, 0], sizes = [1, 256], strides = [1, 1]} : vector<36x256xf32> to vector<1x256xf32>
    %cst_40 = arith.constant 8.500000e-01 : f32
    %169 = vector.broadcast %cst_40 : f32 to vector<1x256xf32>
    %170 = arith.cmpf ogt, %168, %169 : vector<1x256xf32>
    %cst_41 = arith.constant 0.000000e+00 : f32
    %cst_42 = arith.constant 1.000000e+00 : f32
    %171 = vector.broadcast %cst_41 : f32 to vector<1x256xf32>
    %172 = vector.broadcast %cst_42 : f32 to vector<1x256xf32>
    %173 = arith.select %170, %171, %172 : vector<1x256xi1>, vector<1x256xf32>
    %c16_i32_43 = arith.constant 16 : i32
    %174 = vector.broadcast %c16_i32_43 : i32 to vector<36x1xi32>
    %175 = arith.cmpi sge, %2, %174 : vector<36x1xi32>
    %c20_i32_44 = arith.constant 20 : i32
    %176 = vector.broadcast %c20_i32_44 : i32 to vector<36x1xi32>
    %177 = arith.cmpi slt, %2, %176 : vector<36x1xi32>
    %178 = arith.andi %175, %177 : vector<36x1xi1>
    %179 = vector.shape_cast %178 : vector<36x1xi1> to vector<36x1xi1>
    %180 = vector.broadcast %179 : vector<36x1xi1> to vector<36x256xi1>
    %181 = vector.shape_cast %173 : vector<1x256xf32> to vector<1x256xf32>
    %182 = vector.broadcast %181 : vector<1x256xf32> to vector<36x256xf32>
    %183 = arith.select %180, %182, %167 : vector<36x256xi1>, vector<36x256xf32>
    %184 = vector.extract_strided_slice %133 {offsets = [32, 0], sizes = [1, 256], strides = [1, 1]} : vector<36x256xf32> to vector<1x256xf32>
    %cst_45 = arith.constant 8.500000e-01 : f32
    %185 = vector.broadcast %cst_45 : f32 to vector<1x256xf32>
    %186 = arith.cmpf ogt, %184, %185 : vector<1x256xf32>
    %cst_46 = arith.constant 0.000000e+00 : f32
    %cst_47 = arith.constant 1.000000e+00 : f32
    %187 = vector.broadcast %cst_46 : f32 to vector<1x256xf32>
    %188 = vector.broadcast %cst_47 : f32 to vector<1x256xf32>
    %189 = arith.select %186, %187, %188 : vector<1x256xi1>, vector<1x256xf32>
    %c28_i32_48 = arith.constant 28 : i32
    %190 = vector.broadcast %c28_i32_48 : i32 to vector<36x1xi32>
    %191 = arith.cmpi sge, %2, %190 : vector<36x1xi32>
    %c32_i32_49 = arith.constant 32 : i32
    %192 = vector.broadcast %c32_i32_49 : i32 to vector<36x1xi32>
    %193 = arith.cmpi slt, %2, %192 : vector<36x1xi32>
    %194 = arith.andi %191, %193 : vector<36x1xi1>
    %195 = vector.shape_cast %194 : vector<36x1xi1> to vector<36x1xi1>
    %196 = vector.broadcast %195 : vector<36x1xi1> to vector<36x256xi1>
    %197 = vector.shape_cast %189 : vector<1x256xf32> to vector<1x256xf32>
    %198 = vector.broadcast %197 : vector<1x256xf32> to vector<36x256xf32>
    %199 = arith.select %196, %198, %183 : vector<36x256xi1>, vector<36x256xf32>
    %200 = arith.mulf %133, %199 : vector<36x256xf32>
    %201 = vector.shape_cast %77 : vector<36x1xi1> to vector<36x1xi1>
    %202 = vector.broadcast %201 : vector<36x1xi1> to vector<36x256xi1>
    %203 = arith.select %202, %133, %125 : vector<36x256xi1>, vector<36x256xf32>
    %204 = vector.shape_cast %60 : vector<36x1xi1> to vector<36x1xi1>
    %205 = vector.broadcast %204 : vector<36x1xi1> to vector<36x256xi1>
    %206 = arith.select %205, %200, %203 : vector<36x256xi1>, vector<36x256xf32>
    %207 = vector.shape_cast %43 : vector<36x1xi1> to vector<36x1xi1>
    %208 = vector.broadcast %207 : vector<36x1xi1> to vector<36x256xi1>
    %209 = arith.select %208, %136, %206 : vector<36x256xi1>, vector<36x256xf32>
    %210 = vector.shape_cast %26 : vector<36x1xi1> to vector<36x1xi1>
    %211 = vector.broadcast %210 : vector<36x1xi1> to vector<36x256xi1>
    %212 = arith.select %211, %150, %209 : vector<36x256xi1>, vector<36x256xf32>
    %cst_50 = arith.constant 0.000000e+00 : f32
    %213 = vector.broadcast %cst_50 : f32 to vector<4x256xf32>
    %cst_51 = arith.constant 0.000000e+00 : f32
    %214 = vector.broadcast %cst_51 : f32 to vector<52x256xf32>
    %215 = tpu.concatenate %1, %213, %212, %214 in 0 : vector<36x256xf32>, vector<4x256xf32>, vector<36x256xf32>, vector<52x256xf32> -> vector<128x256xf32>
    %216 = tpu.transpose %215, [1, 0] : vector<128x256xf32> -> vector<256x128xf32>
    %217 = vector.extract_strided_slice %216 {offsets = [0, 0], sizes = [256, 36], strides = [1, 1]} : vector<256x128xf32> to vector<256x36xf32>
    %c0_52 = arith.constant 0 : index
    %c0_53 = arith.constant 0 : index
    %c0_54 = arith.constant 0 : index
    %218 = vector.load %arg2[%c0_52, %c0_53, %c0_54] : memref<1x256x36xf32, #tpu.memory_space<vmem>>, vector<1x256x36xf32>
    %219 = vector.shape_cast %218 : vector<1x256x36xf32> to vector<256x36xf32>
    %220 = vector.shape_cast %217 : vector<256x36xf32> to vector<1x256x36xf32>
    tpu.vector_store %arg2[%c0_52, %c0_53, %c0_54], %220 {strides = array<i32>} : memref<1x256x36xf32, #tpu.memory_space<vmem>>, vector<1x256x36xf32>,
    %221 = vector.extract_strided_slice %216 {offsets = [0, 40], sizes = [256, 36], strides = [1, 1]} : vector<256x128xf32> to vector<256x36xf32>
    %c0_55 = arith.constant 0 : index
    %c0_56 = arith.constant 0 : index
    %c0_57 = arith.constant 0 : index
    %222 = vector.load %arg3[%c0_55, %c0_56, %c0_57] : memref<1x256x36xf32, #tpu.memory_space<vmem>>, vector<1x256x36xf32>
    %223 = vector.shape_cast %222 : vector<1x256x36xf32> to vector<256x36xf32>
    %224 = vector.shape_cast %221 : vector<256x36xf32> to vector<1x256x36xf32>
    tpu.vector_store %arg3[%c0_55, %c0_56, %c0_57], %224 {strides = array<i32>} : memref<1x256x36xf32, #tpu.memory_space<vmem>>, vector<1x256x36xf32>,
    return
  }
  func.func @transform_0(%arg0: i32) -> (i32, i32, i32) {
    %c0_i32 = arith.constant 0 : i32
    %c0_i32_0 = arith.constant 0 : i32
    %c0_i32_1 = arith.constant 0 : i32
    return %arg0, %c0_i32, %c0_i32_0 : i32, i32, i32
  }
  func.func @transform_1(%arg0: i32) -> (i32, i32, i32) {
    %c0_i32 = arith.constant 0 : i32
    %c0_i32_0 = arith.constant 0 : i32
    %c0_i32_1 = arith.constant 0 : i32
    return %arg0, %c0_i32, %c0_i32_0 : i32, i32, i32
  }
  func.func @transform_2(%arg0: i32) -> (i32, i32, i32) {
    %c0_i32 = arith.constant 0 : i32
    %c0_i32_0 = arith.constant 0 : i32
    %c0_i32_1 = arith.constant 0 : i32
    return %arg0, %c0_i32, %c0_i32_0 : i32, i32, i32
  }
}

</mosaic_0001>

<bundles_post_ra>
// kernel: _lambda_.1
= control target key start
LH: loop header
LB: loop body
LE: loop exit
PB: predicated region body
PF: predicated region fallthrough
CT: control target
= control target key end

     0   :  { %s1334_s9 = smov 0   ;;  %s1777_s0 = inlined_call_operand.vmem [shape: f32[2,36,256], index: 0, kind: input, shape index: {}]   ;;  %s1778_s1 = inlined_call_operand.vmem [shape: f32[2,256,36], index: 1, kind: output, shape index: {0}]   ;;  %s1779_s2 = inlined_call_operand.vmem [shape: f32[2,256,36], index: 2, kind: output, shape index: {1}]  }
   0x1 LB: > { %s1220_s10 = sadd.s32 4294967295, %s1314_s9   ;;  %p1224_p0 = scmp.ge.s32.totalorder %s1314_s9, 1  ;;  %s1314_s9 = sphi %s1334_s9, %s13_s9  }
   0x2   : > { %p115_p1 = scmp.lt.s32.totalorder %s1314_s9, 3 }
   0x4   : > { %p116_p2 = pnand %p1224_p0, %p115_p1 }
   0x5   : > { %p142_p3 = scmp.lt.s32.totalorder (!%p116_p2), %s1220_s10, 1  ;;  %v167_v0 = vlaneseq (!%p116_p2)  ;;  %v1316_v5 = vmov (!%p116_p2), 0.0   ;;  %vm870_vm2 = vcmask (!%p116_p2), 1043456   ;;  %s1318_s19 = smov (!%p116_p2), 88  }
   0x6   : > { %119 = sbr.rel (%p116_p2) target bundleno = 355 (0x163), region = 24 }
   0x7   : > { %v1344_v1 = vshrl.u32 (!%p116_p2), %v167_v0, 7  ;;  %v1346_v2 = vand.u32 (!%p116_p2), 127, %v167_v0 }
   0x9   : > { %v1350_v3 = vadd.s32 (!%p116_p2), 128, %v1346_v2  ;;  %vm444_vm0 = vcmp.eq.s32.totalorder (!%p116_p2), %v1344_v1, 2  ;;  %v1359_v4 = vsub.s32 (!%p116_p2), 0, %v1344_v1  ;;  %vm454_vm1 = vcmp.eq.s32.totalorder (!%p116_p2), %v1344_v1, 3 }
   0xa   : > { %v449_v6 = vsel (!%p116_p2), %vm444_vm0, 10.0, %v1316_v5  ;;  %v176_v30 = vshra.s32 (!%p116_p2), %v1346_v2, 4  ;;  %v180_v38 = vand.u32 (!%p116_p2), 15, %v1346_v2  ;;  %vm294_vm5 = vcmp.ge.s32.totalorder (!%p116_p2), %v1344_v1, 4 }
   0xb   : > { %v177_v10 = vshra.s32 (!%p116_p2), %v1350_v3, 4  ;;  %v181_v11 = vand.u32 (!%p116_p2), 15, %v1350_v3  ;;  %v1368_v12 = vsel (!%p116_p2), %vm454_vm1, 13.0, %v449_v6  ;;  %vm404_vm6 = vcmp.lt.s32.totalorder (!%p116_p2), %v1344_v1, 1 }
   0xc   : > { %vm239_vm7 = vcmp.ge.s32.totalorder (!%p116_p2), %v1344_v1, 2  ;;  %vm244_vm8 = vcmp.lt.s32.totalorder (!%p116_p2), %v1344_v1, 4  ;;  %vm189_vm10 = vcmp.lt.s32.totalorder (!%p116_p2), %v1344_v1, 2 }
   0xd   : > { %s1791_s10 = smov (!%p142_p3, %s1220_s10), 1  ;;  %vm1473_vm12 = vmand %vm239_vm7, %vm244_vm8 }
   0xe   : > { %s1244_s11 = smul.u32 80, %s1791_s10  ;;  %s1242_s15 = sshll.u32 %s1791_s10, 8 }
   0xf   : > { %s1605_s18 = scalar_lea.vmem %s1778_s1, %s1242_s15  ;;  %s1708_s22 = scalar_lea.vmem %s1779_s2, %s1242_s15 }
  0x10   : > { %s1356_s14 = scalar_lea.vmem %s1777_s0, %s1244_s11 }
  0x11   : > { %v158_v7 = vld [vmem:[%s1356_s14 + $0x8] sm:$0xff]  ;;  %v157_v8 = vld [vmem:[%s1356_s14] sm:$0xff]  ;;  %v160_v9 = vld [vmem:[%s1356_s14 + $0x18] sm:$0xff] }
  0x12   : > { %907 = vxpose.xlu1.b32.start [1/10] (short) %v158_v7, 128  ;;  %v505_v13 = vsub.f32 0.0, %v158_v7  ;;  %v555_v14 = vadd.f32 3.0, %v158_v7  ;;  %v596_v15 = vmul.f32 1.442695, %v158_v7  ;;  %875 = vxpose.xlu0.b32.start [1/10] (short) %v157_v8, 128  ;;  %v504_v16 = vsub.f32 0.0, %v157_v8  ;;  %v159_v21 = vld [vmem:[%s1356_s14 + $0x10] sm:$0xff] }
  0x13   : > { %v554_v17 = vadd.f32 3.0, %v157_v8  ;;  %v594_v18 = vmul.f32 1.442695, %v157_v8  ;;  %v507_v19 = vsub.f32 0.0, %v160_v9  ;;  %v557_v20 = vadd.f32 3.0, %v160_v9  ;;  %v162_v34 = vld [vmem:[%s1356_s14 + $0x28] sm:$0xff] }
  0x14   : > { %v516_v22 = vmul.f32 1.442695, %v505_v13  ;;  %v565_v23 = vmax.f32 %v555_v14, 0.0  ;;  %1256 = vpow2.f32 %v596_v15  ;;  %v514_v24 = vmul.f32 1.442695, %v504_v16  ;;  %v161_v35 = vld [vmem:[%s1356_s14 + $0x20] sm:$0xff] }
  0x15   : > { %v564_v25 = vmax.f32 %v554_v17, 0.0  ;;  %1258 = vpow2.f32 %v594_v18  ;;  %v520_v26 = vmul.f32 1.442695, %v507_v19  ;;  %v567_v27 = vmax.f32 %v557_v20, 0.0  ;;  %v164_v46 = vld [vmem:[%s1356_s14 + $0x38] sm:$0xff]  ;;  %v1382_v49 = vld [vmem:[%s1356_s14 + $0x30] sm:$0xff] }
  0x16   : > { %1260 = vpow2.f32 %v516_v22  ;;  %v575_v28 = vmin.f32 %v565_v23, 6.0  ;;  %908 = vxpose.xlu1.b32.cont [2/10] (short) %v160_v9, 128  ;;  %v506_v29 = vsub.f32 0.0, %v159_v21  ;;  %876 = vxpose.xlu0.b32.cont [2/10] (short) %v159_v21, 128  ;;  %v600_v32 = vmul.f32 1.442695, %v160_v9  ;;  %v166_v13 = vld [vmem:[%s1356_s14 + $0x48] sm:$0xf] }
  0x17   : > { %1262 = vpow2.f32 %v514_v24  ;;  %v577_v31 = vmin.f32 %v567_v27, 6.0  ;;  %v556_v33 = vadd.f32 3.0, %v159_v21  ;;  %v598_v37 = vmul.f32 1.442695, %v159_v21 }
  0x18   : > { %1264 = vpow2.f32 %v520_v26  ;;  %v518_v36 = vmul.f32 1.442695, %v506_v29  ;;  %v1375_v39 = vmul.f32 0.16666667, %v575_v28  ;;  %v574_v40 = vmin.f32 %v564_v25, 6.0 }
  0x19   : > { %v1377_v41 = vmul.f32 0.16666667, %v577_v31  ;;  %v566_v42 = vmax.f32 %v556_v33, 0.0  ;;  %v509_v43 = vsub.f32 0.0, %v162_v34  ;;  %v559_v44 = vadd.f32 3.0, %v162_v34 }
  0x1a   : > { %1266 = vpow2.f32 %v518_v36  ;;  %909 = vxpose.xlu1.b32.cont [3/10] (short) %v162_v34, 128  ;;  %v508_v45 = vsub.f32 0.0, %v161_v35  ;;  %877 = vxpose.xlu0.b32.cont [3/10] (short) %v161_v35, 128  ;;  %v558_v48 = vadd.f32 3.0, %v161_v35  ;;  %v511_v55 = vsub.f32 0.0, %v164_v46  ;;  %v165_v26 = vld [vmem:[%s1356_s14 + $0x40] sm:$0xf] }
  0x1b   : > { %1268 = vpow2.f32 %v600_v32  ;;  %vm685_vm3 = vcmp.gt.f32.partialorder %v1377_v41, 0.85  ;;  %v576_v47 = vmin.f32 %v566_v42, 6.0  ;;  %v524_v50 = vmul.f32 1.442695, %v509_v43 }
  0x1c   : > { %1270 = vpow2.f32 %v598_v37  ;;  %v569_v51 = vmax.f32 %v559_v44, 0.0  ;;  %v522_v52 = vmul.f32 1.442695, %v508_v45  ;;  %v568_v54 = vmax.f32 %v558_v48, 0.0 }
  0x1d   : > { %v1384_v53 = vmul.f32 0.16666667, %v576_v47  ;;  %v561_v56 = vadd.f32 3.0, %v164_v46  ;;  %1272 = vpow2.f32 %v524_v50  ;;  %v608_v59 = vmul.f32 1.442695, %v164_v46 }
  0x1e   : > { %v1386_v57 = vpop.eup %1256  ;;  %v579_v58 = vmin.f32 %v569_v51, 6.0  ;;  %910 = vxpose.xlu1.b32.cont [4/10] (short) %v164_v46, 128  ;;  %v510_v60 = vsub.f32 0.0, %v1382_v49  ;;  %878 = vxpose.xlu0.b32.cont [4/10] (short) %v1382_v49, 128  ;;  %1274 = vpow2.f32 %v522_v52  ;;  %v578_v62 = vmin.f32 %v568_v54, 6.0 }
  0x1f   : > { %v1390_v61 = vpop.eup %1258  ;;  %vm684_vm4 = vcmp.gt.f32.partialorder %v1384_v53, 0.85  ;;  %v528_v63 = vmul.f32 1.442695, %v511_v55  ;;  %v1393_v6 = vmul.f32 0.16666667, %v574_v40  ;;  %1276 = vpow2.f32 %v608_v59 }
  0x20   : > { %v1261_v0 = vpop.eup %1260  ;;  %v1317_v7 = vmov 1.0   ;;  %v571_v9 = vmax.f32 %v561_v56, 0.0  ;;  %v1404_v17 = vmul.f32 0.16666667, %v579_v58  ;;  %v1406_v20 = vmul.f32 0.16666667, %v578_v62 }
  0x21   : > { %v1398_v8 = vsel %vm685_vm3, 0.0, %v1317_v7  ;;  %v1263_v14 = vpop.eup %1262  ;;  %v535_v15 = vadd.f32 1.0, %v1261_v0  ;;  %v1402_v16 = vsel %vm684_vm4, 0.0, %v1317_v7  ;;  %1278 = vpow2.f32 %v528_v63 }
  0x22   : > { %v1265_v18 = vpop.eup %1264  ;;  %v534_v19 = vadd.f32 1.0, %v1263_v14  ;;  %v526_v21 = vmul.f32 1.442695, %v510_v60  ;;  %v560_v22 = vadd.f32 3.0, %v1382_v49  ;;  %v513_v24 = vsub.f32 0.0, %v166_v13 }
  0x23   : > { %1280 = vrcp.f32 %v535_v15  ;;  %v537_v23 = vadd.f32 1.0, %v1265_v18  ;;  %v563_v25 = vadd.f32 3.0, %v166_v13  ;;  %v581_v28 = vmin.f32 %v571_v9, 6.0 }
  0x24   : > { %v1267_v27 = vpop.eup %1266  ;;  %1282 = vrcp.f32 %v534_v19  ;;  %v570_v29 = vmax.f32 %v560_v22, 0.0  ;;  %v872_v31 = vsel %vm870_vm2, %v166_v13, 0.0  ;;  %v532_v34 = vmul.f32 1.442695, %v513_v24 }
  0x25   : > { %v1415_v32 = vpop.eup %1268  ;;  %1284 = vrcp.f32 %v537_v23  ;;  %v536_v33 = vadd.f32 1.0, %v1267_v27  ;;  %v573_v35 = vmax.f32 %v563_v25, 0.0  ;;  %911 = vxpose.xlu1.b32.cont [5/10] (short) %v872_v31, 128  ;;  %v512_v40 = vsub.f32 0.0, %v165_v26 }
  0x26   : > { %v1417_v36 = vpop.eup %1270  ;;  %1286 = vpow2.f32 %v526_v21  ;;  %v580_v37 = vmin.f32 %v570_v29, 6.0  ;;  %v562_v42 = vadd.f32 3.0, %v165_v26  ;;  %v606_v43 = vmul.f32 1.442695, %v1382_v49 }
  0x27   : > { %1288 = vrcp.f32 %v536_v33  ;;  %v583_v44 = vmin.f32 %v573_v35, 6.0  ;;  %v871_v45 = vsel %vm870_vm2, %v165_v26, 0.0  ;;  %v1273_v46 = vpop.eup %1272  ;;  %v1421_v47 = vmul.f32 0.16666667, %v581_v28 }
  0x28   : > { %v530_v48 = vmul.f32 1.442695, %v512_v40  ;;  %v572_v50 = vmax.f32 %v562_v42, 0.0  ;;  %879 = vxpose.xlu0.b32.cont [5/10] (short) %v871_v45, 128  ;;  %v1425_v51 = vcvt.s32.f32 %v177_v10  ;;  %v1275_v52 = vpop.eup %1274  ;;  %v539_v54 = vadd.f32 1.0, %v1273_v46 }
  0x29   : > { %1290 = vpow2.f32 %v532_v34  ;;  %v1427_v55 = vmul.f32 0.16666667, %v583_v44  ;;  %v1431_v49 = vcvt.s32.f32 %v181_v11  ;;  %v1433_v56 = vpop.eup %1276  ;;  %v538_v58 = vadd.f32 1.0, %v1275_v52 }
  0x2a   : > { %v1435_v59 = vmul.f32 0.16666667, %v580_v37  ;;  %1292 = vpow2.f32 %v530_v48  ;;  %v582_v60 = vmin.f32 %v572_v50, 6.0  ;;  %v615_v10 = vmul.f32 %v1386_v57, %v1368_v12 }
  0x2b   : > { %v1279_v62 = vpop.eup %1278  ;;  %1294 = vpow2.f32 %v606_v43  ;;  %vm749_vm9 = vcmp.gt.f32.partialorder %v1427_v55, 0.85  ;;  %v705_v3 = vrot.slane %v1398_v8, %v1359_v4  ;;  %v635_v13 = vsel %vm404_vm6, %v1431_v49, %v1425_v51 }
  0x2c   : > { %1296 = vrcp.f32 %v539_v54  ;;  %v541_v11 = vadd.f32 1.0, %v1279_v62  ;;  %v1444_v63 = vsel %vm749_vm9, 0.0, %v1317_v7  ;;  %v1446_v0 = vmul.f32 0.16666667, %v582_v60 }
  0x2d   : > { %v1281_v9 = vpop.eup %1280  ;;  %v707_v14 = vsel %vm294_vm5, %v705_v3, 1.0  ;;  %v1456_v57 = vcvt.s32.f32 %v176_v30  ;;  %v1460_v8 = vcvt.s32.f32 %v180_v38  ;;  %1298 = vrcp.f32 %v538_v58 }
  0x2e   : > { %v1283_v15 = vpop.eup %1282  ;;  %vm748_vm11 = vcmp.gt.f32.partialorder %v1446_v0, 0.85  ;;  %v645_v18 = vmul.f32 1.05, %v1281_v9  ;;  %v781_v19 = vmul.f32 %v707_v14, %v1375_v39  ;;  %1300 = vrcp.f32 %v541_v11 }
  0x2f   : > { %v1285_v21 = vpop.eup %1284  ;;  %v769_v22 = vrot.slane %v1444_v63, %v1359_v4  ;;  %v1467_v23 = vsel %vm748_vm11, 0.0, %v1317_v7  ;;  %v644_v30 = vmul.f32 1.05, %v1283_v15  ;;  %v634_v25 = vsel %vm404_vm6, %v1460_v8, %v1456_v57 }
  0x30   : > { %v1287_v38 = vpop.eup %1286  ;;  %v1231_v24 = vadd.f32 -0.025, %v645_v18  ;;  %v821_v39 = vsel %vm294_vm5, %v781_v19, %v1281_v9  ;;  %v701_v26 = vrot.slane %v1402_v16, %v1359_v4  ;;  %v614_v29 = vmul.f32 %v1390_v61, %v1368_v12 }
  0x31   : > { %v1289_v27 = vpop.eup %1288  ;;  %v540_v28 = vadd.f32 1.0, %v1287_v38  ;;  %v1230_v31 = vadd.f32 -0.025, %v644_v30  ;;  %v169_v33 = vadd.s32 8, %v1344_v1  ;;  %v841_v35 = vsel %vm1473_vm12, %v615_v10, %v821_v39 }
  0x32   : > { %v665_v34 = vadd.f32 %v1231_v24, %v635_v13  ;;  %v706_v37 = vsel %vm294_vm5, %v701_v26, 1.0  ;;  %v647_v40 = vmul.f32 1.05, %v1285_v21  ;;  %v646_v44 = vmul.f32 1.05, %v1289_v27 }
  0x33   : > { %v1291_v42 = vpop.eup %1290  ;;  %1302 = vrcp.f32 %v540_v28  ;;  %v664_v43 = vadd.f32 %v1230_v31, %v634_v25  ;;  %v780_v16 = vmul.f32 %v706_v37, %v1393_v6  ;;  %vm200_vm13 = vcmp.ge.s32.totalorder %v169_v33, 12 }
  0x34   : > { %v1293_v45 = vpop.eup %1292  ;;  %v543_v46 = vadd.f32 1.0, %v1291_v42  ;;  %v675_v12 = vmul.f32 8.0, %v665_v34  ;;  %vm205_vm14 = vcmp.lt.s32.totalorder %v169_v33, 14  ;;  %vm255_vm15 = vcmp.ge.s32.totalorder %v169_v33, 14 }
  0x35   : > { %v1493_v61 = vpop.eup %1294  ;;  %v674_v48 = vmul.f32 8.0, %v664_v43  ;;  %v820_v50 = vsel %vm294_vm5, %v780_v16, %v1283_v15  ;;  %vm355_vm0 = vcmp.lt.s32.totalorder %v169_v33, 9  ;;  %v542_v54 = vadd.f32 1.0, %v1293_v45  ;;  %vm1530_vm6 = vmand %vm200_vm13, %vm205_vm14 }
  0x36   : > { %v1497_v52 = vpop.eup %1296  ;;  %v861_v6 = vsel %vm189_vm10, %v675_v12, %v841_v35  ;;  %v840_v58 = vsel %vm1473_vm12, %v614_v29, %v820_v50  ;;  %vm415_vm1 = vcmp.lt.s32.totalorder %v169_v33, 13  ;;  %1304 = vrcp.f32 %v543_v46 }
  0x37   : > { %912 = vxpose.xlu1.b32.cont [6/10] (short) %v861_v6, 128  ;;  %v860_v60 = vsel %vm189_vm10, %v674_v48, %v840_v58  ;;  %vm1506_vm3 = vmand %vm200_vm13, %vm415_vm1  ;;  %vm465_vm4 = vcmp.eq.s32.totalorder %v169_v33, 14  ;;  %vm475_vm5 = vcmp.eq.s32.totalorder %v169_v33, 15  ;;  %v1299_v10 = vpop.eup %1298  ;;  %v1233_v9 = vadd.f32 -0.025, %v647_v40 }
  0x38   : > { %880 = vxpose.xlu0.b32.cont [6/10] (short) %v860_v60, 128  ;;  %v470_v3 = vsel %vm465_vm4, 16.0, %v1316_v5  ;;  %v637_v11 = vsel %vm1506_vm3, %v1431_v49, %v1425_v51  ;;  %v803_v13 = vsel %vm355_vm0, %v1377_v41, %v1285_v21  ;;  %v1517_v14 = vpop.eup %1300  ;;  %v636_v18 = vsel %vm1506_vm3, %v1460_v8, %v1456_v57 }
  0x39   : > { %v480_v15 = vsel %vm475_vm5, 30.0, %v470_v3  ;;  %v1232_v19 = vadd.f32 -0.025, %v646_v44  ;;  %v802_v2 = vsel %vm355_vm0, %v1384_v53, %v1289_v27  ;;  %v667_v38 = vadd.f32 %v1233_v9, %v637_v11 }
  0x3a   : > { %v617_v30 = vmul.f32 %v1415_v32, %v480_v15  ;;  %v616_v24 = vmul.f32 %v1417_v36, %v480_v15  ;;  %v170_v39 = vadd.s32 16, %v1344_v1  ;;  %vm717_vm7 = vcmp.gt.f32.partialorder %v1404_v17, 0.85 }
  0x3b   : > { %v666_v21 = vadd.f32 %v1232_v19, %v636_v18  ;;  %v732_v25 = vsub.s32 4, %v1344_v1  ;;  %vm716_vm8 = vcmp.gt.f32.partialorder %v1406_v20, 0.85  ;;  %v677_v53 = vmul.f32 8.0, %v667_v38 }
  0x3c   : > { %v843_v32 = vsel %vm255_vm15, %v617_v30, %v803_v13  ;;  %v842_v36 = vsel %vm255_vm15, %v616_v24, %v802_v2  ;;  %vm316_vm9 = vcmp.lt.s32.totalorder %v170_v39, 20  ;;  %vm366_vm10 = vcmp.ge.s32.totalorder %v170_v39, 20 }
  0x3d   : > { %v1303_v26 = vpop.eup %1302  ;;  %v676_v27 = vmul.f32 8.0, %v666_v21  ;;  %vm371_vm11 = vcmp.lt.s32.totalorder %v170_v39, 21  ;;  %v719_v28 = vsel %vm717_vm7, 0.0, %v1317_v7  ;;  %v863_v29 = vsel %vm1530_vm6, %v677_v53, %v843_v32 }
  0x3e   : > { %vm1542_vm12 = vmand %vm366_vm10, %vm371_vm11  ;;  %v737_v34 = vrot.slane %v719_v28, %v732_v25  ;;  %v718_v35 = vsel %vm716_vm8, 0.0, %v1317_v7  ;;  %v171_v33 = vadd.s32 24, %v1344_v1  ;;  %1306 = vrcp.f32 %v542_v54  ;;  %913 = vxpose.xlu1.b32.cont [7/10] (short) %v863_v29, 128 }
  0x3f   : > { %v765_v37 = vrot.slane %v1467_v23, %v1359_v4  ;;  %v862_v40 = vsel %vm1530_vm6, %v676_v27, %v842_v36  ;;  %v733_v42 = vrot.slane %v718_v35, %v732_v25  ;;  %v805_v16 = vsel %vm1542_vm12, %v1404_v17, %v1497_v52 }
  0x40   : > { %881 = vxpose.xlu0.b32.cont [7/10] (short) %v862_v40, 128  ;;  %v743_v43 = vsel %vm316_vm9, %v737_v34, 1.0  ;;  %v804_v7 = vsel %vm1542_vm12, %v1406_v20, %v1299_v10  ;;  %vm277_vm13 = vcmp.ge.s32.totalorder %v171_v33, 26  ;;  %v1305_v44 = vpop.eup %1304  ;;  %vm332_vm14 = vcmp.ge.s32.totalorder %v171_v33, 28 }
  0x41   : > { %v785_v23 = vmul.f32 %v743_v43, %v1404_v17  ;;  %v742_v45 = vsel %vm316_vm9, %v733_v42, 1.0  ;;  %vm432_vm15 = vcmp.lt.s32.totalorder %v171_v33, 25  ;;  %vm282_vm0 = vcmp.lt.s32.totalorder %v171_v33, 28 }
  0x42   : > { %v784_v46 = vmul.f32 %v742_v45, %v1406_v20  ;;  %vm487_vm1 = vcmp.eq.s32.totalorder %v171_v33, 26  ;;  %vm497_vm3 = vcmp.eq.s32.totalorder %v171_v33, 27  ;;  %v651_v50 = vmul.f32 1.05, %v1517_v14  ;;  %vm1576_vm4 = vmand %vm277_vm13, %vm282_vm0 }
  0x43   : > { %v825_v12 = vsel %vm316_vm9, %v785_v23, %v805_v16  ;;  %v492_v48 = vsel %vm487_vm1, 33.0, %v1316_v5  ;;  %v777_v17 = vsel %vm332_vm14, %v769_v22, 1.0  ;;  %v641_v20 = vsel %vm432_vm15, %v1431_v49, %v1425_v51 }
  0x44   : > { %914 = vxpose.xlu1.b32.cont [8/10] (short) %v825_v12, 128  ;;  %v824_v52 = vsel %vm316_vm9, %v784_v46, %v804_v7  ;;  %v502_v54 = vsel %vm497_vm3, 23.0, %v492_v48  ;;  %v787_v6 = vmul.f32 %v777_v17, %v1421_v47  ;;  %v1237_v63 = vadd.f32 -0.025, %v651_v50 }
  0x45   : > { %882 = vxpose.xlu0.b32.cont [8/10] (short) %v824_v52, 128  ;;  %v621_v4 = vmul.f32 %v1433_v56, %v502_v54  ;;  %v640_v22 = vsel %vm432_vm15, %v1460_v8, %v1456_v57  ;;  %v650_v58 = vmul.f32 1.05, %v1303_v26  ;;  %v620_v51 = vmul.f32 %v1493_v61, %v502_v54 }
  0x46   : > { %v827_v60 = vsel %vm332_vm14, %v787_v6, %v1517_v14  ;;  %v776_v47 = vsel %vm332_vm14, %v765_v37, 1.0  ;;  %v172_v49 = vadd.s32 32, %v1344_v1  ;;  %v671_v62 = vadd.f32 %v1237_v63, %v641_v20 }
  0x47   : > { %v1236_v10 = vadd.f32 -0.025, %v650_v58  ;;  %v786_v3 = vmul.f32 %v776_v47, %v1435_v59  ;;  %vm227_vm5 = vcmp.lt.s32.totalorder %v171_v33, 26  ;;  %v847_v56 = vsel %vm1576_vm4, %v621_v4, %v827_v60 }
  0x48   : > { %vm393_vm6 = vcmp.lt.s32.totalorder %v172_v49, 33  ;;  %v1307_v57 = vpop.eup %1306  ;;  %v681_v8 = vmul.f32 8.0, %v671_v62  ;;  %vm939_vm7 = vcmask 293888  }
  0x49   : > { %v670_v11 = vadd.f32 %v1236_v10, %v640_v22  ;;  %v826_v61 = vsel %vm332_vm14, %v786_v3, %v1303_v26  ;;  %v809_v1 = vsel %vm393_vm6, %v1427_v55, %v1305_v44  ;;  %v808_v59 = vsel %vm393_vm6, %v1446_v0, %v1307_v57 }
  0x4a   : > { %v846_v9 = vsel %vm1576_vm4, %v620_v51, %v826_v61  ;;  %v867_v13 = vsel %vm227_vm5, %v681_v8, %v847_v56  ;;  %v874_v18 = vsel %vm870_vm2, %v809_v1, 0.0  ;;  %v873_v19 = vsel %vm870_vm2, %v808_v59, 0.0 }
  0x4b   : > { %v680_v14 = vmul.f32 8.0, %v670_v11  ;;  %915 = vxpose.xlu1.b32.cont [9/10] (short) %v867_v13, 128 }
  0x4d   : > { %v866_v15 = vsel %vm227_vm5, %v680_v14, %v846_v9 }
  0x4e   : > { %883 = vxpose.xlu0.b32.cont [9/10] (short) %v866_v15, 128 }
  0x4f   : > { %916 = vxpose.xlu1.b32.end [10/10] (short) %v874_v18, 128 }
  0x52   : > { %884 = vxpose.xlu0.b32.end [10/10] (short) %v873_v19, 128 }
  0xab   : > { %v923_v55 = vpop.trf.xlu1 }
  0xac   : > { %956 = vst.msk [vmem:[%s1605_s18 + $0x80] sm:$0xff] %vm939_vm7, %v923_v55  ;;  %1036 = vrot.lane.b32.xlu1 %v923_v55, %s1318_s19 }
  0xae   : > { %v891_v0 = vpop.trf.xlu0 }
  0xaf   : > { %940 = vst.msk [vmem:[%s1605_s18] sm:$0xff] %vm939_vm7, %v891_v0  ;;  %1004 = vrot.lane.b32.xlu0 %v891_v0, %s1318_s19  ;;  %v924_v2 = vpop.trf.xlu1 }
  0xb0   : > { %957 = vst.msk [vmem:[%s1605_s18 + $0x88] sm:$0xff] %vm939_vm7, %v924_v2 }
  0xb2   : > { %v892_v30 = vpop.trf.xlu0 }
  0xb3   : > { %941 = vst.msk [vmem:[%s1605_s18 + $0x8] sm:$0xff] %vm939_vm7, %v892_v30  ;;  %1006 = vrot.lane.b32.xlu1 %v892_v30, %s1318_s19  ;;  %1038 = vrot.lane.b32.xlu0 %v924_v2, %s1318_s19  ;;  %v925_v38 = vpop.trf.xlu1 }
  0xb4   : > { %958 = vst.msk [vmem:[%s1605_s18 + $0x90] sm:$0xff] %vm939_vm7, %v925_v38 }
  0xb6   : > { %v893_v24 = vpop.trf.xlu0 }
  0xb7   : > { %942 = vst.msk [vmem:[%s1605_s18 + $0x10] sm:$0xff] %vm939_vm7, %v893_v24  ;;  %1008 = vrot.lane.b32.xlu1 %v893_v24, %s1318_s19  ;;  %v926_v39 = vpop.trf.xlu1 }
  0xb8   : > { %959 = vst.msk [vmem:[%s1605_s18 + $0x98] sm:$0xff] %vm939_vm7, %v926_v39  ;;  %1042 = vrot.lane.b32.xlu0 %v926_v39, %s1318_s19 }
  0xba   : > { %v894_v41 = vpop.trf.xlu0 }
  0xbb   : > { %943 = vst.msk [vmem:[%s1605_s18 + $0x18] sm:$0xff] %vm939_vm7, %v894_v41  ;;  %1040 = vrot.lane.b32.xlu1 %v925_v38, %s1318_s19  ;;  %v927_v21 = vpop.trf.xlu1 }
  0xbc   : > { %960 = vst.msk [vmem:[%s1605_s18 + $0xa0] sm:$0xff] %vm939_vm7, %v927_v21 }
  0xbe   : > { %v895_v25 = vpop.trf.xlu0 }
  0xbf   : > { %944 = vst.msk [vmem:[%s1605_s18 + $0x20] sm:$0xff] %vm939_vm7, %v895_v25  ;;  %1010 = vrot.lane.b32.xlu1 %v894_v41, %s1318_s19  ;;  %v928_v53 = vpop.trf.xlu1 }
  0xc0   : > { %961 = vst.msk [vmem:[%s1605_s18 + $0xa8] sm:$0xff] %vm939_vm7, %v928_v53 }
  0xc2   : > { %v896_v32 = vpop.trf.xlu0 }
  0xc3   : > { %945 = vst.msk [vmem:[%s1605_s18 + $0x28] sm:$0xff] %vm939_vm7, %v896_v32  ;;  %1012 = vrot.lane.b32.xlu1 %v895_v25, %s1318_s19  ;;  %1014 = vrot.lane.b32.xlu0 %v896_v32, %s1318_s19  ;;  %v929_v36 = vpop.trf.xlu1 }
  0xc4   : > { %962 = vst.msk [vmem:[%s1605_s18 + $0xb0] sm:$0xff] %vm939_vm7, %v929_v36 }
  0xc6   : > { %v897_v26 = vpop.trf.xlu0 }
  0xc7   : > { %946 = vst.msk [vmem:[%s1605_s18 + $0x30] sm:$0xff] %vm939_vm7, %v897_v26  ;;  %1044 = vrot.lane.b32.xlu1 %v927_v21, %s1318_s19  ;;  %1046 = vrot.lane.b32.xlu0 %v928_v53, %s1318_s19  ;;  %v930_v27 = vpop.trf.xlu1 }
  0xc8   : > { %963 = vst.msk [vmem:[%s1605_s18 + $0xb8] sm:$0xff] %vm939_vm7, %v930_v27 }
  0xca   : > { %v898_v28 = vpop.trf.xlu0 }
  0xcb   : > { %947 = vst.msk [vmem:[%s1605_s18 + $0x38] sm:$0xff] %vm939_vm7, %v898_v28  ;;  %1016 = vrot.lane.b32.xlu1 %v897_v26, %s1318_s19  ;;  %1018 = vrot.lane.b32.xlu0 %v898_v28, %s1318_s19  ;;  %v931_v29 = vpop.trf.xlu1 }
  0xcc   : > { %964 = vst.msk [vmem:[%s1605_s18 + $0xc0] sm:$0xff] %vm939_vm7, %v931_v29 }
  0xce   : > { %v899_v31 = vpop.trf.xlu0 }
  0xcf   : > { %948 = vst.msk [vmem:[%s1605_s18 + $0x40] sm:$0xff] %vm939_vm7, %v899_v31  ;;  %1048 = vrot.lane.b32.xlu1 %v929_v36, %s1318_s19  ;;  %1050 = vrot.lane.b32.xlu0 %v930_v27, %s1318_s19  ;;  %v932_v34 = vpop.trf.xlu1 }
  0xd0   : > { %965 = vst.msk [vmem:[%s1605_s18 + $0xc8] sm:$0xff] %vm939_vm7, %v932_v34 }
  0xd2   : > { %v900_v35 = vpop.trf.xlu0 }
  0xd3   : > { %949 = vst.msk [vmem:[%s1605_s18 + $0x48] sm:$0xff] %vm939_vm7, %v900_v35  ;;  %1020 = vrot.lane.b32.xlu1 %v899_v31, %s1318_s19  ;;  %1022 = vrot.lane.b32.xlu0 %v900_v35, %s1318_s19  ;;  %v933_v33 = vpop.trf.xlu1 }
  0xd4   : > { %966 = vst.msk [vmem:[%s1605_s18 + $0xd0] sm:$0xff] %vm939_vm7, %v933_v33 }
  0xd6   : > { %v901_v37 = vpop.trf.xlu0 }
  0xd7   : > { %950 = vst.msk [vmem:[%s1605_s18 + $0x50] sm:$0xff] %vm939_vm7, %v901_v37  ;;  %1052 = vrot.lane.b32.xlu1 %v931_v29, %s1318_s19  ;;  %1054 = vrot.lane.b32.xlu0 %v932_v34, %s1318_s19  ;;  %v934_v40 = vpop.trf.xlu1 }
  0xd8   : > { %967 = vst.msk [vmem:[%s1605_s18 + $0xd8] sm:$0xff] %vm939_vm7, %v934_v40 }
  0xda   : > { %v902_v42 = vpop.trf.xlu0 }
  0xdb   : > { %951 = vst.msk [vmem:[%s1605_s18 + $0x58] sm:$0xff] %vm939_vm7, %v902_v42  ;;  %1024 = vrot.lane.b32.xlu1 %v901_v37, %s1318_s19  ;;  %1026 = vrot.lane.b32.xlu0 %v902_v42, %s1318_s19  ;;  %v935_v43 = vpop.trf.xlu1 }
  0xdc   : > { %968 = vst.msk [vmem:[%s1605_s18 + $0xe0] sm:$0xff] %vm939_vm7, %v935_v43 }
  0xde   : > { %v903_v16 = vpop.trf.xlu0 }
  0xdf   : > { %952 = vst.msk [vmem:[%s1605_s18 + $0x60] sm:$0xff] %vm939_vm7, %v903_v16  ;;  %1056 = vrot.lane.b32.xlu1 %v933_v33, %s1318_s19  ;;  %1058 = vrot.lane.b32.xlu0 %v934_v40, %s1318_s19  ;;  %v936_v7 = vpop.trf.xlu1 }
  0xe0   : > { %969 = vst.msk [vmem:[%s1605_s18 + $0xe8] sm:$0xff] %vm939_vm7, %v936_v7 }
  0xe2   : > { %v904_v44 = vpop.trf.xlu0 }
  0xe3   : > { %953 = vst.msk [vmem:[%s1605_s18 + $0x68] sm:$0xff] %vm939_vm7, %v904_v44  ;;  %1028 = vrot.lane.b32.xlu1 %v903_v16, %s1318_s19  ;;  %1030 = vrot.lane.b32.xlu0 %v904_v44, %s1318_s19  ;;  %v937_v23 = vpop.trf.xlu1 }
  0xe4   : > { %970 = vst.msk [vmem:[%s1605_s18 + $0xf0] sm:$0xff] %vm939_vm7, %v937_v23 }
  0xe6   : > { %v905_v45 = vpop.trf.xlu0 }
  0xe7   : > { %954 = vst.msk [vmem:[%s1605_s18 + $0x70] sm:$0xff] %vm939_vm7, %v905_v45  ;;  %1060 = vrot.lane.b32.xlu1 %v935_v43, %s1318_s19  ;;  %1062 = vrot.lane.b32.xlu0 %v936_v7, %s1318_s19  ;;  %v938_v46 = vpop.trf.xlu1 }
  0xe8   : > { %971 = vst.msk [vmem:[%s1605_s18 + $0xf8] sm:$0xff] %vm939_vm7, %v938_v46 }
  0xea   : > { %v906_v12 = vpop.trf.xlu0 }
  0xeb   : > { %955 = vst.msk [vmem:[%s1605_s18 + $0x78] sm:$0xff] %vm939_vm7, %v906_v12  ;;  %1032 = vrot.lane.b32.xlu1 %v905_v45, %s1318_s19  ;;  %1034 = vrot.lane.b32.xlu0 %v906_v12, %s1318_s19 }
  0xef   : > { %1064 = vrot.lane.b32.xlu1 %v937_v23, %s1318_s19  ;;  %1066 = vrot.lane.b32.xlu0 %v938_v46, %s1318_s19 }
 0x11e   : > { %v1037_v48 = vpop.permute.xlu1 %1036 }
 0x11f   : > { %1116 = vst.msk [vmem:[%s1708_s22 + $0x80] sm:$0xff] %vm939_vm7, %v1037_v48 }
 0x121   : > { %v1005_v50 = vpop.permute.xlu0 %1004 }
 0x122   : > { %1100 = vst.msk [vmem:[%s1708_s22] sm:$0xff] %vm939_vm7, %v1005_v50 }
 0x125   : > { %v1007_v17 = vpop.permute.xlu1 %1006  ;;  %v1039_v52 = vpop.permute.xlu0 %1038 }
 0x126   : > { %1101 = vst.msk [vmem:[%s1708_s22 + $0x8] sm:$0xff] %vm939_vm7, %v1007_v17  ;;  %1117 = vst.msk [vmem:[%s1708_s22 + $0x88] sm:$0xff] %vm939_vm7, %v1039_v52 }
 0x129   : > { %v1009_v54 = vpop.permute.xlu1 %1008 }
 0x12a   : > { %1102 = vst.msk [vmem:[%s1708_s22 + $0x10] sm:$0xff] %vm939_vm7, %v1009_v54  ;;  %v1043_v20 = vpop.permute.xlu0 %1042 }
 0x12b   : > { %1119 = vst.msk [vmem:[%s1708_s22 + $0x98] sm:$0xff] %vm939_vm7, %v1043_v20 }
 0x12d   : > { %v1041_v6 = vpop.permute.xlu1 %1040 }
 0x12e   : > { %1118 = vst.msk [vmem:[%s1708_s22 + $0x90] sm:$0xff] %vm939_vm7, %v1041_v6 }
 0x131   : > { %v1011_v5 = vpop.permute.xlu1 %1010 }
 0x132   : > { %1103 = vst.msk [vmem:[%s1708_s22 + $0x18] sm:$0xff] %vm939_vm7, %v1011_v5 }
 0x135   : > { %v1013_v4 = vpop.permute.xlu1 %1012  ;;  %v1015_v63 = vpop.permute.xlu0 %1014 }
 0x136   : > { %1104 = vst.msk [vmem:[%s1708_s22 + $0x20] sm:$0xff] %vm939_vm7, %v1013_v4  ;;  %1105 = vst.msk [vmem:[%s1708_s22 + $0x28] sm:$0xff] %vm939_vm7, %v1015_v63 }
 0x139   : > { %v1045_v22 = vpop.permute.xlu1 %1044  ;;  %v1047_v58 = vpop.permute.xlu0 %1046 }
 0x13a   : > { %1120 = vst.msk [vmem:[%s1708_s22 + $0xa0] sm:$0xff] %vm939_vm7, %v1045_v22  ;;  %1121 = vst.msk [vmem:[%s1708_s22 + $0xa8] sm:$0xff] %vm939_vm7, %v1047_v58 }
 0x13d   : > { %v1017_v60 = vpop.permute.xlu1 %1016  ;;  %v1019_v51 = vpop.permute.xlu0 %1018 }
 0x13e   : > { %1106 = vst.msk [vmem:[%s1708_s22 + $0x30] sm:$0xff] %vm939_vm7, %v1017_v60  ;;  %1107 = vst.msk [vmem:[%s1708_s22 + $0x38] sm:$0xff] %vm939_vm7, %v1019_v51 }
 0x141   : > { %v1049_v47 = vpop.permute.xlu1 %1048  ;;  %v1051_v49 = vpop.permute.xlu0 %1050 }
 0x142   : > { %1122 = vst.msk [vmem:[%s1708_s22 + $0xb0] sm:$0xff] %vm939_vm7, %v1049_v47  ;;  %1123 = vst.msk [vmem:[%s1708_s22 + $0xb8] sm:$0xff] %vm939_vm7, %v1051_v49 }
 0x145   : > { %v1021_v62 = vpop.permute.xlu1 %1020  ;;  %v1023_v10 = vpop.permute.xlu0 %1022 }
 0x146   : > { %1108 = vst.msk [vmem:[%s1708_s22 + $0x40] sm:$0xff] %vm939_vm7, %v1021_v62  ;;  %1109 = vst.msk [vmem:[%s1708_s22 + $0x48] sm:$0xff] %vm939_vm7, %v1023_v10 }
 0x149   : > { %v1053_v3 = vpop.permute.xlu1 %1052  ;;  %v1055_v56 = vpop.permute.xlu0 %1054 }
 0x14a   : > { %1124 = vst.msk [vmem:[%s1708_s22 + $0xc0] sm:$0xff] %vm939_vm7, %v1053_v3  ;;  %1125 = vst.msk [vmem:[%s1708_s22 + $0xc8] sm:$0xff] %vm939_vm7, %v1055_v56 }
 0x14d   : > { %v1025_v57 = vpop.permute.xlu1 %1024  ;;  %v1027_v8 = vpop.permute.xlu0 %1026 }
 0x14e   : > { %1110 = vst.msk [vmem:[%s1708_s22 + $0x50] sm:$0xff] %vm939_vm7, %v1025_v57  ;;  %1111 = vst.msk [vmem:[%s1708_s22 + $0x58] sm:$0xff] %vm939_vm7, %v1027_v8 }
 0x151   : > { %v1057_v11 = vpop.permute.xlu1 %1056  ;;  %v1059_v61 = vpop.permute.xlu0 %1058 }
 0x152   : > { %1126 = vst.msk [vmem:[%s1708_s22 + $0xd0] sm:$0xff] %vm939_vm7, %v1057_v11  ;;  %1127 = vst.msk [vmem:[%s1708_s22 + $0xd8] sm:$0xff] %vm939_vm7, %v1059_v61 }
 0x155   : > { %v1029_v9 = vpop.permute.xlu1 %1028  ;;  %v1031_v1 = vpop.permute.xlu0 %1030 }
 0x156   : > { %1112 = vst.msk [vmem:[%s1708_s22 + $0x60] sm:$0xff] %vm939_vm7, %v1029_v9  ;;  %1113 = vst.msk [vmem:[%s1708_s22 + $0x68] sm:$0xff] %vm939_vm7, %v1031_v1 }
 0x159   : > { %v1061_v13 = vpop.permute.xlu1 %1060  ;;  %v1063_v14 = vpop.permute.xlu0 %1062 }
 0x15a   : > { %1128 = vst.msk [vmem:[%s1708_s22 + $0xe0] sm:$0xff] %vm939_vm7, %v1061_v13  ;;  %1129 = vst.msk [vmem:[%s1708_s22 + $0xe8] sm:$0xff] %vm939_vm7, %v1063_v14 }
 0x15d   : > { %v1033_v59 = vpop.permute.xlu1 %1032  ;;  %v1035_v15 = vpop.permute.xlu0 %1034 }
 0x15e   : > { %1114 = vst.msk [vmem:[%s1708_s22 + $0x70] sm:$0xff] %vm939_vm7, %v1033_v59  ;;  %1115 = vst.msk [vmem:[%s1708_s22 + $0x78] sm:$0xff] %vm939_vm7, %v1035_v15 }
 0x161   : > { %v1065_v18 = vpop.permute.xlu1 %1064  ;;  %v1067_v19 = vpop.permute.xlu0 %1066 }
 0x162   : > { %1130 = vst.msk [vmem:[%s1708_s22 + $0xf0] sm:$0xff] %vm939_vm7, %v1065_v18  ;;  %1131 = vst.msk [vmem:[%s1708_s22 + $0xf8] sm:$0xff] %vm939_vm7, %v1067_v19 }
 0x163 PF: > { %s13_s9 = sadd.s32 1, %s1314_s9  }
 0x164   : > { %p10_p4 = scmp.ge.s32.totalorder %s13_s9, 4  }
 0x166   :  { %12 = sbr.rel (!%p10_p4) target bundleno = 1 (0x1), region = 66 }

</bundles_post_ra>
